<compile_context>
chip_gen: v6e
topology: v6e:2x2x1
jax: 0.10.0
libtpu: 0.0.40
codegen_flags: <defaults>
</compile_context>

<pallas_src>
import math
import numpy as np
import jax
import jax.numpy as jnp
from jax.experimental import pallas as pl
from jax.experimental.pallas import tpu as pltpu


def _make_time_encode_kernel(k, has_bias):
    """Kernel over refs: (t_fold, wmask[, bias], out).

    t_fold : (tn, k)  -- row r holds logical rows r*k .. r*k+k-1 of t
    wmask  : (k, L)   -- row j is w replicated into lane group j, 0 elsewhere
    bias   : (1, L)   -- b tiled k times (optional)
    out    : (tn, L)  -- L = k*D, lane-dense
    """
    def kernel(*refs):
        if has_bias:
            t_ref, wm_ref, b_ref, o_ref = refs
        else:
            t_ref, wm_ref, o_ref = refs
            b_ref = None
        # Dense (tn, L) argument: for lane l in group j only wmask[j, l] != 0,
        # so the sum reproduces t[r*k + j] * w[l % D] exactly (adding 0.0s).
        acc = t_ref[:, 0:1] * wm_ref[0:1, :]
        for j in range(1, k):
            acc = acc + t_ref[:, j:j + 1] * wm_ref[j:j + 1, :]
        if has_bias:
            acc = acc + b_ref[...]
        o_ref[...] = jnp.cos(acc).astype(o_ref.dtype)   # dense EUP/VALU cos
    return kernel


def time_encode(t, w, b=None, *, tile_rows=None, out_dtype=jnp.float32,
                min_pallas_elements=64 * 1024):
    """t: [N], w: [D], b: [D] or None (zero bias) -> [N, D] out_dtype."""
    t = jnp.asarray(t, jnp.float32).reshape(-1)
    w = jnp.asarray(w, jnp.float32).reshape(-1)
    N = int(t.shape[0])
    D = int(w.shape[0])
    has_bias = b is not None
    if has_bias:
        b = jnp.asarray(b, jnp.float32).reshape(-1)

    # Tiny problems: XLA's fused elementwise already wins; skip kernel dispatch.
    if N * D < min_pallas_elements:
        arg = t[:, None] * w[None, :]
        if has_bias:
            arg = arg + b[None, :]
        return jnp.cos(arg).astype(out_dtype)

    # Lane folding: pack k logical rows per lane-dense output row.
    # L = lcm(D, 128) keeps stores unmasked for any small D; bounded so the
    # masked-sum VALU cost stays modest.
    if D < 128:
        k = 128 // math.gcd(D, 128)
        L = k * D                       # = lcm(D, 128)
        if k > 16 or L > 1024:
            k, L = 1, D
    else:
        k, L = 1, D

    # Pad N to a multiple of k (tiny; demo sizes need no padding).
    pad = (-N) % k
    if pad:
        t = jnp.concatenate([t, jnp.zeros((pad,), jnp.float32)])
    Np = N + pad
    nrows = Np // k                     # rows of the folded output

    # Single folded t operand: one contiguous (nrows, k) stream.
    t_f = t.reshape(nrows, k)

    # Masked, group-resident weights (tiny, stays in VMEM for the whole grid).
    if k == 1:
        wmask = w.reshape(1, D)
    else:
        lane = jnp.arange(L)
        group = lane // D
        w_tiled = jnp.tile(w, k)
        wmask = jnp.where(group[None, :] == jnp.arange(k)[:, None],
                          w_tiled[None, :], 0.0).astype(jnp.float32)
    b_row = jnp.tile(b, k).reshape(1, L) if has_bias else None

    # Row tile: ~4 MiB output blocks (multiple of 8 rows).  Default policy
    # also caps at ceil(nrows/2) so the parallel grid has >= 2 blocks and both
    # v7x TensorCores are used; explicit tile_rows is respected as given.
    out_itemsize = jnp.dtype(out_dtype).itemsize
    if tile_rows is None:
        tn = max(8, ((4 << 20) // (L * out_itemsize)) // 8 * 8)
        if nrows >= 16:
            half = ((pl.cdiv(nrows, 2) + 7) // 8) * 8
            tn = min(tn, half)
    else:
        tn = max(8, (int(tile_rows) // 8) * 8)
    tn = min(tn, nrows)
    grid = (pl.cdiv(nrows, tn),)        # ragged edge handled by output masking

    in_specs = [pl.BlockSpec((tn, k), lambda i: (i, 0)),   # folded t (tiled)
                pl.BlockSpec((k, L), lambda i: (0, 0))]    # wmask (resident)
    operands = [t_f, wmask]
    if has_bias:
        in_specs.append(pl.BlockSpec((1, L), lambda i: (0, 0)))  # bias (resident)
        operands.append(b_row)

    cost = pl.CostEstimate(
        flops=int(max(1, 2 * k - 1) * nrows * L),
        transcendentals=int(nrows * L),
        bytes_accessed=int(nrows * L * out_itemsize + nrows * k * 4
                           + k * L * 4 + (L * 4 if has_bias else 0)),
    )

    out = pl.pallas_call(
        _make_time_encode_kernel(k, has_bias),
        out_shape=jax.ShapeDtypeStruct((nrows, L), out_dtype),
        grid=grid,
        in_specs=in_specs,
        out_specs=pl.BlockSpec((tn, L), lambda i: (i, 0)),
        compiler_params=pltpu.CompilerParams(
            dimension_semantics=("parallel",)),
        cost_estimate=cost,
    )(*operands)

    # Intended as a free row-major bitcast of the folded buffer; if HLO shows
    # a relayout copy, hand consumers the folded (nrows, L) view instead.
    out = out.reshape(Np, D)
    if pad:
        out = out[:N]
    return out


def make_time_encode_params(dimension):
    # Deterministic parameter init, matching the PyTorch __init__.
    w = (1.0 / 10 ** np.linspace(0, 9, dimension)).astype(np.float32)  # (D,)
    b = np.zeros((dimension,), dtype=np.float32)                        # (D,)
    return jnp.asarray(w), jnp.asarray(b)


if __name__ == "__main__":
    key = jax.random.PRNGKey(0)

    # Small shapes consistent with the module: N=256 timestamps, D=32 dims.
    N, D = 256, 32
    t = jax.random.uniform(key, (N,), dtype=jnp.float32) * 100.0
    w, b = make_time_encode_params(D)
    ref = jnp.cos(t[:, None] * w[None, :] + b[None, :])

    # 1) Zero-bias fast form (module semantics), default tiling policy
    #    (>= 2 parallel blocks -> both TCs used on v7x).
    out1 = jax.block_until_ready(time_encode(t, w, None, min_pallas_elements=0))
    # 2) Explicit bias path, multi-block grid (exercises pipelining path).
    out2 = jax.block_until_ready(
        time_encode(t, w, b, tile_rows=16, min_pallas_elements=0))
    # 3) Non-divisible grid (ragged edge masking path).
    out3 = jax.block_until_ready(
        time_encode(t, w, b, tile_rows=24, min_pallas_elements=0))
    for out in (out1, out2, out3):
        assert out.shape == (N, D) and out.dtype == jnp.float32
        np.testing.assert_allclose(np.asarray(out), np.asarray(ref),
                                   rtol=2e-5, atol=2e-5)

    # 4) Already lane-dense dimension (D = 128, no folding, k = 1).
    D2 = 128
    w2, _ = make_time_encode_params(D2)
    ref2 = jnp.cos(t[:, None] * w2[None, :])
    out4 = jax.block_until_ready(
        time_encode(t, w2, None, tile_rows=64, min_pallas_elements=0))
    assert out4.shape == (N, D2) and out4.dtype == jnp.float32
    np.testing.assert_allclose(np.asarray(out4), np.asarray(ref2),
                               rtol=2e-5, atol=2e-5)

    # 5) D that does NOT divide 128 (D = 48): generalized lcm folding
    #    (k = 8, L = 384) keeps stores lane-dense.
    D3 = 48
    w3, _ = make_time_encode_params(D3)
    ref3 = jnp.cos(t[:, None] * w3[None, :])
    out5 = jax.block_until_ready(
        time_encode(t, w3, None, min_pallas_elements=0))
    assert out5.shape == (N, D3) and out5.dtype == jnp.float32
    np.testing.assert_allclose(np.asarray(out5), np.asarray(ref3),
                               rtol=2e-5, atol=2e-5)

    # 6) bf16 output option (v5e store-bandwidth lever); looser tolerance.
    out6 = jax.block_until_ready(
        time_encode(t, w, None, out_dtype=jnp.bfloat16, min_pallas_elements=0))
    assert out6.shape == (N, D) and out6.dtype == jnp.bfloat16
    np.testing.assert_allclose(np.asarray(out6, dtype=np.float32),
                               np.asarray(ref), rtol=1e-2, atol=1e-2)

    print("KERNEL_OK")
</pallas_src>

<mosaic_0001>
module attributes {stable_mosaic.version = 11 : i64} {
  func.func @kernel(%arg0: i32, %arg1: memref<32x4xf32, #tpu.memory_space<vmem>>, %arg2: memref<4x128xf32, #tpu.memory_space<vmem>>, %arg3: memref<32x128xf32, #tpu.memory_space<vmem>>) attributes {dimension_semantics = [#tpu.dimension_semantics<parallel>], iteration_bounds = array<i64: 2>, scalar_prefetch = 0 : i64, scratch_operands = 0 : i64, tpu.core_type = #tpu.core_type<tc>, window_params = [{transform_indices = @transform_0, window_bounds = array<i64: 32, 4>}, {pipeline_mode = #tpu.pipeline_mode<synchronous>, transform_indices = @transform_1, window_bounds = array<i64: 4, 128>}, {transform_indices = @transform_2, window_bounds = array<i64: 32, 128>}]} {
    %c0 = arith.constant 0 : index
    %c0_0 = arith.constant 0 : index
    %0 = vector.load %arg1[%c0, %c0_0] : memref<32x4xf32, #tpu.memory_space<vmem>>, vector<32x1xf32>
    %c0_1 = arith.constant 0 : index
    %c0_2 = arith.constant 0 : index
    %1 = vector.load %arg2[%c0_1, %c0_2] : memref<4x128xf32, #tpu.memory_space<vmem>>, vector<1x128xf32>
    %2 = vector.broadcast %0 : vector<32x1xf32> to vector<32x128xf32>
    %3 = vector.broadcast %1 : vector<1x128xf32> to vector<32x128xf32>
    %4 = arith.mulf %2, %3 : vector<32x128xf32>
    %c0_3 = arith.constant 0 : index
    %c1 = arith.constant 1 : index
    %5 = vector.load %arg1[%c0_3, %c1] : memref<32x4xf32, #tpu.memory_space<vmem>>, vector<32x1xf32>
    %c1_4 = arith.constant 1 : index
    %c0_5 = arith.constant 0 : index
    %6 = vector.load %arg2[%c1_4, %c0_5] : memref<4x128xf32, #tpu.memory_space<vmem>>, vector<1x128xf32>
    %7 = vector.broadcast %5 : vector<32x1xf32> to vector<32x128xf32>
    %8 = vector.broadcast %6 : vector<1x128xf32> to vector<32x128xf32>
    %9 = arith.mulf %7, %8 : vector<32x128xf32>
    %10 = arith.addf %4, %9 : vector<32x128xf32>
    %c0_6 = arith.constant 0 : index
    %c2 = arith.constant 2 : index
    %11 = vector.load %arg1[%c0_6, %c2] : memref<32x4xf32, #tpu.memory_space<vmem>>, vector<32x1xf32>
    %c2_7 = arith.constant 2 : index
    %c0_8 = arith.constant 0 : index
    %12 = vector.load %arg2[%c2_7, %c0_8] : memref<4x128xf32, #tpu.memory_space<vmem>>, vector<1x128xf32>
    %13 = vector.broadcast %11 : vector<32x1xf32> to vector<32x128xf32>
    %14 = vector.broadcast %12 : vector<1x128xf32> to vector<32x128xf32>
    %15 = arith.mulf %13, %14 : vector<32x128xf32>
    %16 = arith.addf %10, %15 : vector<32x128xf32>
    %c0_9 = arith.constant 0 : index
    %c3 = arith.constant 3 : index
    %17 = vector.load %arg1[%c0_9, %c3] : memref<32x4xf32, #tpu.memory_space<vmem>>, vector<32x1xf32>
    %c3_10 = arith.constant 3 : index
    %c0_11 = arith.constant 0 : index
    %18 = vector.load %arg2[%c3_10, %c0_11] : memref<4x128xf32, #tpu.memory_space<vmem>>, vector<1x128xf32>
    %19 = vector.broadcast %17 : vector<32x1xf32> to vector<32x128xf32>
    %20 = vector.broadcast %18 : vector<1x128xf32> to vector<32x128xf32>
    %21 = arith.mulf %19, %20 : vector<32x128xf32>
    %22 = arith.addf %16, %21 : vector<32x128xf32>
    %23 = math.cos %22 : vector<32x128xf32>
    %c0_12 = arith.constant 0 : index
    %c0_13 = arith.constant 0 : index
    %24 = vector.load %arg3[%c0_12, %c0_13] : memref<32x128xf32, #tpu.memory_space<vmem>>, vector<32x128xf32>
    tpu.vector_store %arg3[%c0_12, %c0_13], %23 {strides = array<i32>} : memref<32x128xf32, #tpu.memory_space<vmem>>, vector<32x128xf32>,
    return
  }
  func.func @transform_0(%arg0: i32) -> (i32, i32) {
    %c0_i32 = arith.constant 0 : i32
    %c0_i32_0 = arith.constant 0 : i32
    return %arg0, %c0_i32 : i32, i32
  }
  func.func @transform_1(%arg0: i32) -> (i32, i32) {
    %c0_i32 = arith.constant 0 : i32
    %c0_i32_0 = arith.constant 0 : i32
    %c0_i32_1 = arith.constant 0 : i32
    return %c0_i32, %c0_i32_0 : i32, i32
  }
  func.func @transform_2(%arg0: i32) -> (i32, i32) {
    %c0_i32 = arith.constant 0 : i32
    %c0_i32_0 = arith.constant 0 : i32
    return %arg0, %c0_i32 : i32, i32
  }
}

</mosaic_0001>

<bundles_post_ra>
// kernel: tpu_custom_call.1
= control target key start
LH: loop header
LB: loop body
LE: loop exit
PB: predicated region body
PF: predicated region fallthrough
CT: control target
= control target key end

     0   :  { %7 = vsyncpa [#allocation3], 0  ;;  %s1381_s0 = inlined_call_operand.vmem [shape: f32[64,4], index: 0, kind: input, shape index: {}]   ;;  %s1382_s1 = inlined_call_operand.vmem [shape: f32[4,128], index: 1, kind: input, shape index: {}]   ;;  %s1383_s2 = inlined_call_operand.hbm [shape: f32[64,128], index: 2, kind: output, shape index: {}]  }
   0x1   :  { %9 = vsyncpa [#allocation3 + $0x1], 0  ;;  %s971_s9 = smov 0   ;;  %s973_s10 = smov 0  }
   0x2   :  { %s975_s11 = smov 0   ;;  %s977_s12 = smov 0  }
   0x3 LB: > { %s992_s13 = sadd.s32 4294967295, %s941_s12   ;;  %s757_s14 = sadd.s32 4294967294, %s941_s12   ;;  %s941_s12 = sphi %s977_s12, %s1393_s12   ;;  %s937_s11 = sphi %s975_s11, %s1392_s11   ;;  %s933_s10 = sphi %s973_s10, %s1391_s10   ;;  %s929_s9 = sphi %s971_s9, %s1390_s9  }
   0x4   : > { %s996_s15 = sadd.s32 1, %s941_s12   ;;  %s69_s16 = sadd.s32 1, %s937_s11 }
   0x5   : > { %s66_s17 = ssub.s32 %s941_s12, %s996_s15  ;;  %p79_p0 = scmp.ne.s32.totalorder %s937_s11, %s933_s10 }
   0x6   : > { %p67_p1 = scmp.eq.s32.totalorder %s66_s17, 0  ;;  %p80_p2 = scmp.eq.s32.totalorder %s992_s13, 1 }
   0x7   : > { %p85_p3 = scmp.ne.s32.totalorder %s933_s10, %s929_s9  ;;  %p86_p4 = scmp.eq.s32.totalorder %s757_s14, 1 }
   0x8   : > { %s1007_s18 = scalar_select %p67_p1, %s937_s11, %s69_s16  }
   0x9   : > { %p1009_p5 = por %p80_p2, %p79_p0  ;;  %p1013_p6 = por %p86_p4, %p85_p3 }
   0xa   : > { %p760_p7 = scmp.ge.s32.totalorder %s941_s12, 1  ;;  %p116_p8 = scmp.lt.s32.totalorder %s941_s12, 3 }
   0xc   : > { %p117_p9 = pnand %p760_p7, %p116_p8 }
   0xd   : > { %s762_s21 = sshll.u32 (!%p117_p9), %s992_s13, 2  ;;  %s135_s6 = sand.u32 (!%p117_p9), 1, %s933_s10  }
   0xe   : > { %120 = sbr.rel (%p117_p9) target bundleno = 330 (0x14a), region = 28  ;;  %p139_p10 = scmp.lt.s32.totalorder (!%p117_p9), %s762_s21, 7 }
   0xf   : > { %s761_s7 = sshll.u32 (!%p117_p9), %s135_s6, 5  ;;  %s789_s14 = sshll.u32 (!%p117_p9), %s992_s13, 9 }
  0x10   : > { %s1286_s8 = scalar_lea.vmem (!%p117_p9), [#allocation2], %s761_s7  ;;  %s1341_s13 = scalar_lea.sflag (!%p117_p9), [#allocation3], %s135_s6 }
  0x11   : > { %s695_s16 = sshll.u32 (!%p117_p9), %s1286_s8, 4  ;;  %s953_s24 = smov (!%p117_p9), [#allocation2]   ;;  %s1335_s16 = int_to_ptr.vmem [resolvable:$true] %s695_s16 }
  0x12   : > { %s881_s23 = scalar_lea.vmem (!%p117_p9), %s1335_s16, 512 }
  0x13   : > { %v943_v0 = vmov 0   ;;  %s1395_s21 = smov (!%p139_p10, %s762_s21), 7  ;;  %v944_v5 = vmov 1   ;;  %v945_v6 = vmov 2   ;;  %v946_v7 = vmov 3   ;;  %p882_p11 = scmp.ne.s32.totalorder %s1335_s16, %s881_s23 }
  0x14   : > { %858 = vset.pattern.permute.xlu1 %v943_v0  ;;  %857 = vset.pattern.permute.xlu0 %v943_v0  ;;  %s763_s22 = sshll.u32 %s1395_s21, 3  ;;  %v764_v8 = vld [vmem:[%s1382_s1] ss:$0 sm:$0xff]  ;;  %v765_v16 = vld [vmem:[%s1382_s1 + $0x1] ss:$0 sm:$0xff] }
  0x15   : > { %s142_s25 = scalar_lea.vmem %s1381_s0, %s763_s22  ;;  %v766_v21 = vld [vmem:[%s1382_s1 + $0x2] ss:$0 sm:$0xff]  ;;  %v1035_v27 = vld [vmem:[%s1382_s1 + $0x3] ss:$0 sm:$0xff]  ;;  %s1333_s22 = scalar_lea.hbm %s1383_s2, %s789_s14 }
  0x16   : > { %v147_v1 = vld [vmem:[%s142_s25 + $0x10] sm:$0xff]  ;;  %v145_v2 = vld [vmem:[%s142_s25] sm:$0xff]  ;;  %v148_v3 = vld [vmem:[%s142_s25 + $0x18] sm:$0xff]  ;;  %p883_p12 = pnand %p882_p11, %p1009_p5 }
  0x17   : > { %162 = vperm.xlu1 %858, %v147_v1   ;;  %152 = vperm.xlu0 %857, %v145_v2   ;;  %v146_v4 = vld [vmem:[%s142_s25 + $0x8] sm:$0xff]  ;;  %s885_s25 = sshll.u32 %s953_s24, 4  ;;  %s886_s25 = int_to_ptr.vmem [resolvable:$false] %s885_s25 }
  0x18   : > { %p884_p13 = pneg %p883_p12  ;;  %s887_s26 = scalar_lea.vmem %s886_s25, 1024 }
  0x19   : > { %p888_p0 = scmp.lt.s32.totalorder %s1335_s16, %s886_s25  ;;  %p889_p1 = scmp.lt.s32.totalorder %s887_s26, %s881_s23 }
  0x1b   : > { %167 = vperm.xlu1 %858, %v148_v3   ;;  %157 = vperm.xlu0 %857, %v146_v4   ;;  %p890_p2 = por %p889_p1, %p888_p0 }
  0x1d   : > { %p891_p3 = pnand %p890_p2, %p884_p13 }
  0x1f   : > { %860 = vset.pattern.permute.xlu1 %v944_v5  ;;  %859 = vset.pattern.permute.xlu0 %v944_v5 }
  0x20   : > { %184 = vperm.xlu1 %860, %v146_v4   ;;  %180 = vperm.xlu0 %859, %v145_v2  }
  0x24   : > { %188 = vperm.xlu1 %860, %v147_v1   ;;  %192 = vperm.xlu0 %859, %v148_v3  }
  0x28   : > { %861 = vset.pattern.permute.xlu1 %v945_v6  ;;  %862 = vset.pattern.permute.xlu0 %v945_v6 }
  0x29   : > { %209 = vperm.xlu1 %861, %v145_v2   ;;  %213 = vperm.xlu0 %862, %v146_v4  }
  0x2d   : > { %217 = vperm.xlu1 %861, %v147_v1   ;;  %863 = vset.pattern.permute.xlu0 %v946_v7 }
  0x2e   : > { %238 = vperm.xlu0 %863, %v145_v2  }
  0x31   : > { %221 = vperm.xlu1 %861, %v148_v3  }
  0x32   : > { %250 = vperm.xlu0 %863, %v148_v3  }
  0x35   : > { %864 = vset.pattern.permute.xlu1 %v946_v7 }
  0x36   : > { %242 = vperm.xlu1 %864, %v146_v4  }
  0x3a   : > { %246 = vperm.xlu1 %864, %v147_v1  }
  0x92   : > { %v163_v9 = vpop.permute.xlu1 %162  ;;  %v153_v10 = vpop.permute.xlu0 %152 }
  0x93   : > { %v176_v11 = vmul.f32 %v764_v8, %v163_v9  ;;  %v174_v22 = vmul.f32 %v764_v8, %v153_v10  ;;  %v947_v9 = vmov 683565275  }
  0x96   : > { %v168_v12 = vpop.permute.xlu1 %167  ;;  %v158_v13 = vpop.permute.xlu0 %157 }
  0x97   : > { %v177_v35 = vmul.f32 %v764_v8, %v168_v12  ;;  %v175_v37 = vmul.f32 %v764_v8, %v158_v13 }
  0x9b   : > { %v185_v14 = vpop.permute.xlu1 %184  ;;  %v181_v15 = vpop.permute.xlu0 %180 }
  0x9c   : > { %v199_v23 = vmul.f32 %v765_v16, %v181_v15  ;;  %v200_v38 = vmul.f32 %v765_v16, %v185_v14  ;;  %v949_v14 = vmov 2131351028  }
  0x9e   : > { %v203_v28 = vadd.f32 %v199_v23, %v174_v22  ;;  %v204_v49 = vadd.f32 %v200_v38, %v175_v37 }
  0x9f   : > { %v189_v17 = vpop.permute.xlu1 %188  ;;  %v193_v18 = vpop.permute.xlu0 %192 }
  0xa0   : > { %v201_v19 = vmul.f32 %v765_v16, %v189_v17  ;;  %v202_v30 = vmul.f32 %v765_v16, %v193_v18  ;;  %v950_v16 = vmov 2102212464   ;;  %v951_v18 = vmov 920167782  }
  0xa2   : > { %v205_v20 = vadd.f32 %v201_v19, %v176_v11  ;;  %v206_v41 = vadd.f32 %v202_v30, %v177_v35  ;;  %v948_v11 = vmov 2475754826  }
  0xa4   : > { %v210_v24 = vpop.permute.xlu1 %209  ;;  %v214_v25 = vpop.permute.xlu0 %213 }
  0xa5   : > { %v228_v26 = vmul.f32 %v766_v21, %v210_v24  ;;  %v229_v44 = vmul.f32 %v766_v21, %v214_v25  ;;  %v952_v25 = vmov 1326507024  }
  0xa7   : > { %v232_v33 = vadd.f32 %v228_v26, %v203_v28  ;;  %v233_v54 = vadd.f32 %v229_v44, %v204_v49 }
  0xa8   : > { %v218_v29 = vpop.permute.xlu1 %217 }
  0xa9   : > { %v230_v31 = vmul.f32 %v766_v21, %v218_v29  ;;  %v239_v32 = vpop.permute.xlu0 %238 }
  0xaa   : > { %v257_v34 = vmul.f32 %v1035_v27, %v239_v32 }
  0xab   : > { %v1038_v36 = vadd.f32 %v230_v31, %v205_v20 }
  0xac   : > { %v1040_v39 = vadd.f32 %v257_v34, %v232_v33  ;;  %v222_v40 = vpop.permute.xlu1 %221 }
  0xad   : > { %v231_v42 = vmul.f32 %v766_v21, %v222_v40  ;;  %v251_v43 = vpop.permute.xlu0 %250 }
  0xae   : > { %v265_v45 = vand.u32 2147483647, %v1040_v39  ;;  %v268_v46 = vand.u32 2139095040, %v1040_v39  ;;  %v260_v48 = vmul.f32 %v1035_v27, %v251_v43  ;;  %vm267_vm15 = vcmp.lt.s32.totalorder %v1040_v39, 0 }
  0xaf   : > { %v235_v47 = vadd.f32 %v231_v42, %v206_v41 }
  0xb0   : > { %v269_v50 = vshrl.u32 %v268_v46, 23  ;;  %v272_v51 = vand.u32 8388607, %v265_v45 }
  0xb1   : > { %v1047_v52 = vadd.f32 %v260_v48, %v235_v47  ;;  %v243_v53 = vpop.permute.xlu1 %242 }
  0xb2   : > { %v768_v55 = vadd.s32 4294967169, %v269_v50  ;;  %v258_v56 = vmul.f32 %v1035_v27, %v243_v53  ;;  %v273_v61 = vor.u32 8388608, %v272_v51 }
  0xb3   : > { %v574_v57 = vand.u32 2147483647, %v1047_v52  ;;  %v577_v58 = vand.u32 2139095040, %v1047_v52 }
  0xb4   : > { %v275_v59 = vadd.s32 1, %v768_v55  ;;  %v1052_v60 = vadd.f32 %v258_v56, %v233_v54  ;;  %v1057_v5 = vshll.u32 %v273_v61, 8 }
  0xb5   : > { %v578_v62 = vshrl.u32 %v577_v58, 23  ;;  %v581_v63 = vand.u32 8388607, %v574_v57  ;;  %v247_v49 = vpop.permute.xlu1 %246 }
  0xb6   : > { %vm276_vm0 = vcmp.gt.s32.totalorder %v275_v59, 0  ;;  %v371_v0 = vand.u32 2139095040, %v1052_v60 }
  0xb7   : > { %v277_v1 = vsel %vm276_vm0, %v275_v59, 0  ;;  %v780_v2 = vadd.s32 4294967169, %v578_v62  ;;  %v582_v6 = vor.u32 8388608, %v581_v63  ;;  %v259_v63 = vmul.f32 %v1035_v27, %v247_v49 }
  0xb8   : > { %v278_v3 = vshrl.u32 %v277_v1, 5  ;;  %v279_v4 = vand.u32 31, %v277_v1  ;;  %v372_v7 = vshrl.u32 %v371_v0, 23 }
  0xb9   : > { %v584_v13 = vadd.s32 1, %v780_v2  ;;  %v1079_v53 = vshll.u32 %v582_v6, 8 }
  0xba   : > { %v280_v8 = vsub.s32 32, %v279_v4  ;;  %v282_v10 = vshll.u32 %v947_v9, %v279_v4  ;;  %v285_v12 = vshll.u32 %v948_v11, %v279_v4  ;;  %v288_v15 = vshll.u32 %v949_v14, %v279_v4 }
  0xbb   : > { %v291_v17 = vshll.u32 %v950_v16, %v279_v4  ;;  %v294_v19 = vshll.u32 %v951_v18, %v279_v4  ;;  %vm297_vm1 = vcmp.lt.s32.totalorder %v278_v3, 1  ;;  %vm298_vm2 = vcmp.lt.s32.totalorder %v278_v3, 2 }
  0xbc   : > { %v283_v20 = vshrl.u32 %v948_v11, %v280_v8  ;;  %v286_v21 = vshrl.u32 %v949_v14, %v280_v8  ;;  %v289_v22 = vshrl.u32 %v950_v16, %v280_v8  ;;  %v281_v23 = vshrl.u32 %v947_v9, %v280_v8 }
  0xbd   : > { %v292_v24 = vshrl.u32 %v951_v18, %v280_v8  ;;  %v295_v26 = vshrl.u32 %v952_v25, %v280_v8  ;;  %vm299_vm3 = vcmp.lt.s32.totalorder %v278_v3, 3  ;;  %vm585_vm4 = vcmp.gt.s32.totalorder %v584_v13, 0 }
  0xbe   : > { %v284_v28 = vor.u32 %v283_v20, %v282_v10  ;;  %v287_v29 = vor.u32 %v286_v21, %v285_v12  ;;  %v290_v30 = vor.u32 %v289_v22, %v288_v15  ;;  %vm300_vm5 = vcmp.lt.s32.totalorder %v278_v3, 4 }
  0xbf   : > { %v293_v31 = vor.u32 %v292_v24, %v291_v17  ;;  %v296_v32 = vor.u32 %v295_v26, %v294_v19  ;;  %v586_v33 = vsel %vm585_vm4, %v584_v13, 0  ;;  %v772_v62 = vadd.s32 4294967169, %v372_v7 }
  0xc0   : > { %v301_v34 = vsel %vm297_vm1, %v281_v23, %v284_v28  ;;  %v302_v35 = vsel %vm300_vm5, %v290_v30, 2102212464  ;;  %v305_v37 = vsel %vm297_vm1, %v284_v28, %v287_v29  ;;  %v309_v38 = vsel %vm297_vm1, %v287_v29, %v290_v30 }
  0xc1   : > { %v303_v40 = vsel %vm299_vm3, %v287_v29, %v302_v35  ;;  %v306_v41 = vsel %vm300_vm5, %v293_v31, 920167782  ;;  %v310_v42 = vsel %vm300_vm5, %v296_v32, 1326507024  ;;  %v587_v43 = vshrl.u32 %v586_v33, 5 }
  0xc2   : > { %v304_v44 = vsel %vm298_vm2, %v301_v34, %v303_v40  ;;  %v307_v46 = vsel %vm299_vm3, %v290_v30, %v306_v41  ;;  %v311_v47 = vsel %vm299_vm3, %v293_v31, %v310_v42  ;;  %v588_v48 = vand.u32 31, %v586_v33 }
  0xc3   : > { %v308_v50 = vsel %vm298_vm2, %v305_v37, %v307_v46  ;;  %v312_v51 = vsel %vm298_vm2, %v309_v38, %v311_v47  ;;  %v320_v59 = vmul.u32 %v1057_v5, %v304_v44  ;;  %vm606_vm6 = vcmp.lt.s32.totalorder %v587_v43, 1 }
  0xc4   : > { %v1082_v54 = vmul.u32.u64.low %v1057_v5, %v312_v51  ;;  %v1083_v55 = vmul.u32.u64.high %v1057_v5, %v312_v51, %v1082_v54  ;;  %v1086_v56 = vmul.u32.u64.low %v1057_v5, %v308_v50  ;;  %v1087_v58 = vmul.u32.u64.high %v1057_v5, %v308_v50, %v1086_v56 }
  0xc5   : > { %v589_v61 = vsub.s32 32, %v588_v48  ;;  %v591_v0 = vshll.u32 %v947_v9, %v588_v48  ;;  %v594_v1 = vshll.u32 %v948_v11, %v588_v48  ;;  %v597_v2 = vshll.u32 %v949_v14, %v588_v48 }
  0xc6   : > { %v600_v8 = vshll.u32 %v950_v16, %v588_v48  ;;  %vm322_vm7 = vc.u32 %v1083_v55, %v1086_v56  ;;  %v323_v27 = vadd.s32 1, %v1087_v58  ;;  %v603_v7 = vshll.u32 %v951_v18, %v588_v48 }
  0xc7   : > { %v592_v3 = vshrl.u32 %v948_v11, %v589_v61  ;;  %v595_v4 = vshrl.u32 %v949_v14, %v589_v61  ;;  %v598_v6 = vshrl.u32 %v950_v16, %v589_v61  ;;  %v601_v5 = vshrl.u32 %v951_v18, %v589_v61 }
  0xc8   : > { %v604_v15 = vshrl.u32 %v952_v25, %v589_v61  ;;  %v324_v17 = vsel %vm322_vm7, %v323_v27, %v1087_v58  ;;  %vm607_vm8 = vcmp.lt.s32.totalorder %v587_v43, 2  ;;  %vm609_vm9 = vcmp.lt.s32.totalorder %v587_v43, 4 }
  0xc9   : > { %v593_v10 = vor.u32 %v592_v3, %v591_v0  ;;  %v596_v12 = vor.u32 %v595_v4, %v594_v1  ;;  %v599_v13 = vor.u32 %v598_v6, %v597_v2  ;;  %v602_v19 = vor.u32 %v601_v5, %v600_v8 }
  0xca   : > { %v325_v20 = vadd.s32 %v324_v17, %v320_v59  ;;  %v590_v21 = vshrl.u32 %v947_v9, %v589_v61  ;;  %v605_v22 = vor.u32 %v604_v15, %v603_v7  ;;  %vm608_vm10 = vcmp.lt.s32.totalorder %v587_v43, 3 }
  0xcb   : > { %v611_v23 = vsel %vm609_vm9, %v599_v13, 2102212464  ;;  %v614_v24 = vsel %vm606_vm6, %v593_v10, %v596_v12  ;;  %v615_v26 = vsel %vm609_vm9, %v602_v19, 920167782  ;;  %v618_v28 = vsel %vm606_vm6, %v596_v12, %v599_v13 }
  0xcc   : > { %v326_v29 = vadd.s32 536870912, %v325_v20  ;;  %v610_v30 = vsel %vm606_vm6, %v590_v21, %v593_v10  ;;  %v616_v31 = vsel %vm608_vm10, %v599_v13, %v615_v26  ;;  %v619_v32 = vsel %vm609_vm9, %v605_v22, 1326507024 }
  0xcd   : > { %v612_v33 = vsel %vm608_vm10, %v596_v12, %v611_v23  ;;  %v617_v34 = vsel %vm607_vm8, %v614_v24, %v616_v31  ;;  %v620_v35 = vsel %vm608_vm10, %v602_v19, %v619_v32  ;;  %v378_v37 = vadd.s32 1, %v772_v62 }
  0xce   : > { %v1111_v38 = vshrl.u32 %v326_v29, 30  ;;  %v621_v40 = vsel %vm607_vm8, %v618_v28, %v620_v35  ;;  %v1115_v41 = vmul.u32.u64.low %v1079_v53, %v617_v34  ;;  %v1116_v42 = vmul.u32.u64.high %v1079_v53, %v617_v34, %v1115_v41 }
  0xcf   : > { %v1120_v44 = vmul.u32.u64.low %v1079_v53, %v621_v40  ;;  %v1121_v46 = vmul.u32.u64.high %v1079_v53, %v621_v40, %v1120_v44  ;;  %v368_v47 = vand.u32 2147483647, %v1052_v60  ;;  %vm379_vm11 = vcmp.gt.s32.totalorder %v378_v37, 0 }
  0xd0   : > { %v328_v48 = vshll.u32 %v1111_v38, 30  ;;  %v613_v49 = vsel %vm607_vm8, %v610_v30, %v612_v33  ;;  %v380_v50 = vsel %vm379_vm11, %v378_v37, 0  ;;  %v1127_v51 = vadd.f32 %v259_v63, %v1038_v36 }
  0xd1   : > { %v382_v54 = vand.u32 31, %v380_v50  ;;  %v632_v59 = vadd.s32 1, %v1116_v42  ;;  %v629_v61 = vmul.u32 %v1079_v53, %v613_v49  ;;  %vm631_vm12 = vc.u32 %v1121_v46, %v1115_v41 }
  0xd2   : > { %v329_v58 = vsub.s32 %v325_v20, %v328_v48  ;;  %v375_v62 = vand.u32 8388607, %v368_v47  ;;  %v321_v27 = vadd.s32 %v1086_v56, %v1083_v55  ;;  %v381_v7 = vshrl.u32 %v380_v50, 5 }
  0xd3   : > { %v633_v43 = vsel %vm631_vm12, %v632_v59, %v1116_v42  ;;  %v383_v1 = vsub.s32 32, %v382_v54  ;;  %v385_v13 = vshll.u32 %v947_v9, %v382_v54  ;;  %v388_v15 = vshll.u32 %v948_v11, %v382_v54 }
  0xd4   : > { %v331_v0 = vsub.s32 0, %v329_v58  ;;  %v634_v2 = vadd.s32 %v633_v43, %v629_v61  ;;  %v376_v63 = vor.u32 8388608, %v375_v62  ;;  %v394_v17 = vshll.u32 %v950_v16, %v382_v54 }
  0xd5   : > { %v386_v6 = vshrl.u32 %v948_v11, %v383_v1  ;;  %v389_v8 = vshrl.u32 %v949_v14, %v383_v1  ;;  %v395_v53 = vshrl.u32 %v951_v18, %v383_v1  ;;  %v392_v10 = vshrl.u32 %v950_v16, %v383_v1 }
  0xd6   : > { %v769_v3 = vmin.u32 %v331_v0, %v329_v58  ;;  %v635_v36 = vadd.s32 536870912, %v634_v2  ;;  %v391_v20 = vshll.u32 %v949_v14, %v382_v54  ;;  %v398_v21 = vshrl.u32 %v952_v25, %v383_v1 }
  0xd7   : > { %v1150_v22 = vshll.u32 %v376_v63, 8  ;;  %v387_v55 = vor.u32 %v386_v6, %v385_v13  ;;  %v390_v56 = vor.u32 %v389_v8, %v388_v15  ;;  %v396_v23 = vor.u32 %v395_v53, %v394_v17 }
  0xd8   : > { %v333_v4 = vclz %v769_v3  ;;  %v1141_v5 = vshrl.u32 %v635_v36, 30  ;;  %v393_v28 = vor.u32 %v392_v10, %v391_v20  ;;  %v397_v29 = vshll.u32 %v951_v18, %v382_v54 }
  0xd9   : > { %v384_v32 = vshrl.u32 %v947_v9, %v383_v1  ;;  %vm400_vm14 = vcmp.lt.s32.totalorder %v381_v7, 1  ;;  %vm403_vm0 = vcmp.lt.s32.totalorder %v381_v7, 4  ;;  %vm401_vm1 = vcmp.lt.s32.totalorder %v381_v7, 2 }
  0xda   : > { %v770_v12 = vadd.s32 4294967294, %v333_v4  ;;  %v637_v19 = vshll.u32 %v1141_v5, 30  ;;  %v399_v35 = vor.u32 %v398_v21, %v397_v29  ;;  %v408_v42 = vsel %vm400_vm14, %v387_v55, %v390_v56 }
  0xdb   : > { %v409_v44 = vsel %vm403_vm0, %v396_v23, 920167782  ;;  %vm402_vm2 = vcmp.lt.s32.totalorder %v381_v7, 3  ;;  %v405_v49 = vsel %vm403_vm0, %v393_v28, 2102212464  ;;  %v351_v61 = vsub.s32 4, %v1111_v38 }
  0xdc   : > { %vm771_vm13 = vcmp.lt.s32.totalorder %v770_v12, 0  ;;  %v1152_v26 = vsub.s32 %v634_v2, %v637_v19  ;;  %v410_v59 = vsel %vm402_vm2, %v393_v28, %v409_v44  ;;  %v413_v43 = vsel %vm403_vm0, %v399_v35, 1326507024 }
  0xdd   : > { %v336_v24 = vsel %vm771_vm13, 0, %v770_v12  ;;  %v411_v0 = vsel %vm401_vm1, %v408_v42, %v410_v59  ;;  %v404_v2 = vsel %vm400_vm14, %v384_v32, %v387_v55  ;;  %v406_v3 = vsel %vm402_vm2, %v390_v56, %v405_v49 }
  0xde   : > { %v337_v30 = vsub.s32 32, %v336_v24  ;;  %v341_v31 = vsub.s32 4294967266, %v336_v24  ;;  %v338_v33 = vshll.u32 %v329_v58, %v336_v24  ;;  %v640_v34 = vsub.s32 0, %v1152_v26 }
  0xdf   : > { %v412_v58 = vsel %vm400_vm14, %v390_v56, %v393_v28  ;;  %v414_v36 = vsel %vm402_vm2, %v396_v23, %v413_v43  ;;  %v1169_v6 = vmul.u32.u64.low %v1150_v22, %v411_v0  ;;  %v1170_v8 = vmul.u32.u64.high %v1150_v22, %v411_v0, %v1169_v6 }
  0xe0   : > { %v339_v37 = vshrl.u32 %v321_v27, %v337_v30  ;;  %v342_v40 = vadd.s32 127, %v341_v31  ;;  %v781_v48 = vmin.u32 %v640_v34, %v1152_v26  ;;  %v415_v4 = vsel %vm401_vm1, %v412_v58, %v414_v36 }
  0xe1   : > { %v1173_v10 = vmul.u32.u64.low %v1150_v22, %v415_v4  ;;  %v1174_v12 = vmul.u32.u64.high %v1150_v22, %v415_v4, %v1173_v10  ;;  %vm1178_vm3 = vcmp.le.f32.partialorder %v265_v45, 0.7853982  ;;  %v407_v15 = vsel %vm401_vm1, %v404_v2, %v406_v3 }
  0xe2   : > { %v340_v50 = vor.u32 %v339_v37, %v338_v33  ;;  %v343_v54 = vshll.u32 %v342_v40, 23  ;;  %v642_v62 = vclz %v781_v48  ;;  %v474_v17 = vand.u32 2139095040, %v1127_v51 }
  0xe3   : > { %v352_v20 = vsel %vm267_vm15, %v351_v61, %v1111_v38  ;;  %v471_v55 = vand.u32 2147483647, %v1127_v51  ;;  %v630_v56 = vadd.s32 %v1115_v41, %v1121_v46  ;;  %v426_v24 = vadd.s32 1, %v1170_v8 }
  0xe4   : > { %v344_v1 = vor.u32 4788187, %v343_v54  ;;  %v782_v63 = vadd.s32 4294967294, %v642_v62  ;;  %v347_v27 = vcvt.s32.f32 %v340_v50  ;;  %v423_v7 = vmul.u32 %v1150_v22, %v407_v15 }
  0xe5   : > { %vm425_vm5 = vc.u32 %v1174_v12, %v1169_v6  ;;  %v475_v29 = vshrl.u32 %v474_v17, 23  ;;  %v354_v41 = vsel %vm1178_vm3, 0, %v352_v20  ;;  %v660_v40 = vsub.s32 4, %v1141_v5 }
  0xe6   : > { %v345_v53 = vand.u32 2147483647, %v344_v1  ;;  %vm783_vm4 = vcmp.lt.s32.totalorder %v782_v63, 0  ;;  %v427_v32 = vsel %vm425_vm5, %v426_v24, %v1170_v8  ;;  %v1205_v49 = vand.u32 3, %v354_v41 }
  0xe7   : > { %v645_v21 = vsel %vm783_vm4, 0, %v782_v63  ;;  %v428_v46 = vadd.s32 %v427_v32, %v423_v7  ;;  %v776_v34 = vadd.s32 4294967169, %v475_v29  ;;  %vm576_vm6 = vcmp.lt.s32.totalorder %v1047_v52, 0 }
  0xe8   : > { %v348_v19 = vmul.f32 %v347_v27, %v345_v53  ;;  %v646_v45 = vsub.s32 32, %v645_v21  ;;  %v650_v23 = vsub.s32 4294967266, %v645_v21  ;;  %v647_v30 = vshll.u32 %v1152_v26, %v645_v21 }
  0xe9   : > { %v478_v26 = vand.u32 8388607, %v471_v55  ;;  %v429_v42 = vadd.s32 536870912, %v428_v46  ;;  %v481_v44 = vadd.s32 1, %v776_v34  ;;  %v1213_v62 = vsel %vm576_vm6, %v660_v40, %v1141_v5 }
  0xea   : > { %v349_v28 = vxor.u32 2147483648, %v348_v19  ;;  %v648_v31 = vshrl.u32 %v630_v56, %v646_v45  ;;  %v651_v38 = vadd.s32 127, %v650_v23  ;;  %vm1218_vm8 = vcmp.le.f32.partialorder %v574_v57, 0.7853982 }
  0xeb   : > { %v1208_v50 = vshrl.u32 %v429_v42, 30  ;;  %vm482_vm7 = vcmp.gt.s32.totalorder %v481_v44, 0  ;;  %v479_v58 = vor.u32 8388608, %v478_v26  ;;  %vm363_vm9 = vcmp.eq.s32.totalorder %v1205_v49, 2 }
  0xec   : > { %v350_v33 = vsel %vm267_vm15, %v349_v28, %v348_v19  ;;  %v649_v35 = vor.u32 %v648_v31, %v647_v30  ;;  %v652_v37 = vshll.u32 %v651_v38, 23  ;;  %v483_v61 = vsel %vm482_vm7, %v481_v44, 0 }
  0xed   : > { %v353_v22 = vsel %vm1178_vm3, %v1040_v39, %v350_v33  ;;  %v431_v0 = vshll.u32 %v1208_v50, 30  ;;  %v485_v43 = vand.u32 31, %v483_v61  ;;  %v663_v5 = vsel %vm1218_vm8, 0, %v1213_v62 }
  0xee   : > { %865 = vcosq.f32 %v353_v22  ;;  %v653_v48 = vor.u32 4788187, %v652_v37  ;;  %v656_v59 = vcvt.s32.f32 %v649_v35  ;;  %v424_v4 = vadd.s32 %v1169_v6, %v1174_v12 }
  0xef   : > { %867 = vsinq.f32 %v353_v22  ;;  %v1222_v3 = vsub.s32 %v428_v46, %v431_v0  ;;  %v486_v36 = vsub.s32 32, %v485_v43  ;;  %v1229_v8 = vshll.u32 %v479_v58, 8 }
  0xf0   : > { %v654_v54 = vand.u32 2147483647, %v653_v48  ;;  %vm360_vm10 = vcmp.eq.s32.totalorder %v1205_v49, 0  ;;  %v1233_v53 = vshrl.u32 %v483_v61, 5  ;;  %v488_v27 = vshll.u32 %v947_v9, %v485_v43 }
  0xf1   : > { %v434_v57 = vsub.s32 0, %v1222_v3  ;;  %v489_v10 = vshrl.u32 %v948_v11, %v486_v36  ;;  %vm359_vm11 = vcmp.lt.s32.totalorder %v1205_v49, 2  ;;  %v491_v6 = vshll.u32 %v948_v11, %v485_v43 }
  0xf2   : > { %v657_v1 = vmul.f32 %v656_v59, %v654_v54  ;;  %v492_v12 = vshrl.u32 %v949_v14, %v486_v36  ;;  %v495_v15 = vshrl.u32 %v950_v16, %v486_v36  ;;  %vm357_vm12 = vweird.f32 %v1040_v39 }
  0xf3   : > { %v773_v19 = vmin.u32 %v434_v57, %v1222_v3  ;;  %v487_v20 = vshrl.u32 %v947_v9, %v486_v36  ;;  %v494_v21 = vshll.u32 %v949_v14, %v485_v43  ;;  %v490_v11 = vor.u32 %v489_v10, %v488_v27 }
  0xf4   : > { %v658_v63 = vxor.u32 2147483648, %v657_v1  ;;  %v493_v56 = vor.u32 %v492_v12, %v491_v6  ;;  %v497_v45 = vshll.u32 %v950_v16, %v485_v43  ;;  %v498_v28 = vshrl.u32 %v951_v18, %v486_v36 }
  0xf5   : > { %v436_v23 = vclz %v773_v19  ;;  %v496_v24 = vor.u32 %v495_v15, %v494_v21  ;;  %v500_v29 = vshll.u32 %v951_v18, %v485_v43  ;;  %v501_v30 = vshrl.u32 %v952_v25, %v486_v36 }
  0xf6   : > { %v659_v13 = vsel %vm576_vm6, %v658_v63, %v657_v1  ;;  %vm503_vm13 = vcmp.lt.s32.totalorder %v1233_v53, 1  ;;  %vm504_vm14 = vcmp.lt.s32.totalorder %v1233_v53, 2  ;;  %v499_v16 = vor.u32 %v498_v28, %v497_v45 }
  0xf7   : > { %v662_v17 = vsel %vm1218_vm8, %v1047_v52, %v659_v13  ;;  %v774_v31 = vadd.s32 4294967294, %v436_v23  ;;  %vm505_vm15 = vcmp.lt.s32.totalorder %v1233_v53, 3  ;;  %v502_v32 = vor.u32 %v501_v30, %v500_v29 }
  0xf8   : > { %869 = vcosq.f32 %v662_v17  ;;  %vm506_vm0 = vcmp.lt.s32.totalorder %v1233_v53, 4  ;;  %v507_v18 = vsel %vm503_vm13, %v487_v20, %v490_v11  ;;  %v511_v41 = vsel %vm503_vm13, %v490_v11, %v493_v56 }
  0xf9   : > { %871 = vsinq.f32 %v662_v17  ;;  %vm775_vm1 = vcmp.lt.s32.totalorder %v774_v31, 0  ;;  %v508_v33 = vsel %vm506_vm0, %v496_v24, 2102212464  ;;  %v512_v35 = vsel %vm506_vm0, %v499_v16, 920167782 }
  0xfa   : > { %v439_v34 = vsel %vm775_vm1, 0, %v774_v31  ;;  %v509_v22 = vsel %vm505_vm15, %v493_v56, %v508_v33  ;;  %v513_v54 = vsel %vm505_vm15, %v496_v24, %v512_v35  ;;  %v515_v59 = vsel %vm503_vm13, %v493_v56, %v496_v24 }
  0xfb   : > { %v866_v7 = vpop.eup %865  ;;  %v440_v26 = vsub.s32 32, %v439_v34  ;;  %v441_v40 = vshll.u32 %v1222_v3, %v439_v34  ;;  %v444_v42 = vsub.s32 4294967266, %v439_v34  ;;  %v510_v48 = vsel %vm504_vm14, %v507_v18, %v509_v22 }
  0xfc   : > { %v868_v9 = vpop.eup %867  ;;  %v364_v14 = vxor.u32 2147483648, %v866_v7  ;;  %v514_v61 = vsel %vm504_vm14, %v511_v41, %v513_v54  ;;  %v516_v39 = vsel %vm506_vm0, %v502_v32, 1326507024  ;;  %v667_v0 = vand.u32 3, %v663_v5 }
  0xfd   : > { %v361_v38 = vxor.u32 2147483648, %v868_v9  ;;  %v442_v49 = vshrl.u32 %v424_v4, %v440_v26  ;;  %v445_v58 = vadd.s32 127, %v444_v42  ;;  %v517_v43 = vsel %vm505_vm15, %v499_v16, %v516_v39 }
  0xfe   : > { %v365_v25 = vsel %vm363_vm9, %v364_v14, %v868_v9  ;;  %v1300_v1 = vmul.u32.u64.low %v1229_v8, %v514_v61  ;;  %v1301_v3 = vmul.u32.u64.high %v1229_v8, %v514_v61, %v1300_v1  ;;  %v518_v4 = vsel %vm504_vm14, %v515_v59, %v517_v43 }
  0xff   : > { %v362_v46 = vsel %vm360_vm10, %v866_v7, %v361_v38  ;;  %v443_v36 = vor.u32 %v442_v49, %v441_v40  ;;  %v446_v63 = vshll.u32 %v445_v58, 23  ;;  %vm669_vm2 = vcmp.eq.s32.totalorder %v667_v0, 0 }
 0x100   : > { %v366_v37 = vsel %vm359_vm11, %v362_v46, %v365_v25  ;;  %v1306_v57 = vmul.u32.u64.low %v1229_v8, %v518_v4  ;;  %v1307_v27 = vmul.u32.u64.high %v1229_v8, %v518_v4, %v1306_v57  ;;  %v529_v13 = vadd.s32 1, %v1301_v3 }
 0x101   : > { %v367_v44 = vsel %vm357_vm12, nan, %v366_v37  ;;  %v447_v10 = vor.u32 4788187, %v446_v63  ;;  %vm672_vm3 = vcmp.eq.s32.totalorder %v667_v0, 2  ;;  %v450_v15 = vcvt.s32.f32 %v443_v36 }
 0x102   : > { %677 = vst [vmem:[%s1286_s8] sm:$0xff] %v367_v44  ;;  %v526_v53 = vmul.u32 %v1229_v8, %v510_v48  ;;  %v527_v19 = vadd.s32 %v1300_v1, %v1307_v27  ;;  %vm528_vm4 = vc.u32 %v1307_v27, %v1300_v1  ;;  %vm668_vm5 = vcmp.lt.s32.totalorder %v667_v0, 2 }
 0x103   : > { %v448_v12 = vand.u32 2147483647, %v447_v10  ;;  %v530_v11 = vsel %vm528_vm4, %v529_v13, %v1301_v3  ;;  %vm666_vm6 = vweird.f32 %v1047_v52  ;;  %vm370_vm7 = vcmp.lt.s32.totalorder %v1052_v60, 0 }
 0x104   : > { %v531_v45 = vadd.s32 %v530_v11, %v526_v53  ;;  %vm369_vm8 = vcmp.le.f32.partialorder %v368_v47, 0.7853982  ;;  %v454_v30 = vsub.s32 4, %v1208_v50  ;;  %vm460_vm13 = vweird.f32 %v1052_v60 }
 0x105   : > { %v870_v2 = vpop.eup %869  ;;  %v451_v21 = vmul.f32 %v450_v15, %v448_v12  ;;  %vm473_vm14 = vcmp.lt.s32.totalorder %v1127_v51, 0  ;;  %vm472_vm15 = vcmp.le.f32.partialorder %v471_v55, 0.7853982 }
 0x106   : > { %v872_v62 = vpop.eup %871  ;;  %v673_v5 = vxor.u32 2147483648, %v870_v2  ;;  %v532_v28 = vadd.s32 536870912, %v531_v45  ;;  %v455_v14 = vsel %vm370_vm7, %v454_v30, %v1208_v50 }
 0x107   : > { %v670_v6 = vxor.u32 2147483648, %v872_v62  ;;  %v452_v24 = vxor.u32 2147483648, %v451_v21  ;;  %v457_v38 = vsel %vm369_vm8, 0, %v455_v14 }
 0x108   : > { %v674_v17 = vsel %vm672_vm3, %v673_v5, %v872_v62  ;;  %v533_v29 = vshrl.u32 %v532_v28, 30  ;;  %v461_v18 = vand.u32 3, %v457_v38  ;;  %vm563_vm3 = vweird.f32 %v1127_v51 }
 0x109   : > { %v671_v20 = vsel %vm669_vm2, %v870_v2, %v670_v6  ;;  %v453_v8 = vsel %vm370_vm7, %v452_v24, %v451_v21 }
 0x10a   : > { %v675_v56 = vsel %vm668_vm5, %v671_v20, %v674_v17  ;;  %v456_v7 = vsel %vm369_vm8, %v1052_v60, %v453_v8  ;;  %v534_v52 = vshll.u32 %v533_v29, 30  ;;  %vm466_vm10 = vcmp.eq.s32.totalorder %v461_v18, 2 }
 0x10b   : > { %v676_v23 = vsel %vm666_vm6, nan, %v675_v56  ;;  %873 = vcosq.f32 %v456_v7  ;;  %vm462_vm11 = vcmp.lt.s32.totalorder %v461_v18, 2  ;;  %vm463_vm12 = vcmp.eq.s32.totalorder %v461_v18, 0 }
 0x10c   : > { %680 = vst [vmem:[%s1286_s8 + $0x18] sm:$0xff] %v676_v23  ;;  %875 = vsinq.f32 %v456_v7  ;;  %v535_v9 = vsub.s32 %v531_v45, %v534_v52  ;;  %v557_v1 = vsub.s32 4, %v533_v29 }
 0x10e   : > { %v537_v31 = vsub.s32 0, %v535_v9  ;;  %v558_v3 = vsel %vm473_vm14, %v557_v1, %v533_v29 }
 0x10f   : > { %v560_v36 = vsel %vm472_vm15, 0, %v558_v3 }
 0x110   : > { %v777_v16 = vmin.u32 %v537_v31, %v535_v9  ;;  %v564_v63 = vand.u32 3, %v560_v36 }
 0x112   : > { %v539_v32 = vclz %v777_v16  ;;  %vm569_vm0 = vcmp.eq.s32.totalorder %v564_v63, 2  ;;  %vm566_vm1 = vcmp.eq.s32.totalorder %v564_v63, 0  ;;  %vm565_vm2 = vcmp.lt.s32.totalorder %v564_v63, 2 }
 0x114   : > { %v778_v25 = vadd.s32 4294967294, %v539_v32 }
 0x116   : > { %vm779_vm9 = vcmp.lt.s32.totalorder %v778_v25, 0 }
 0x117   : > { %v542_v46 = vsel %vm779_vm9, 0, %v778_v25 }
 0x118   : > { %v874_v33 = vpop.eup %873  ;;  %v543_v22 = vsub.s32 32, %v542_v46  ;;  %v547_v35 = vsub.s32 4294967266, %v542_v46  ;;  %v544_v26 = vshll.u32 %v535_v9, %v542_v46 }
 0x119   : > { %v876_v47 = vpop.eup %875  ;;  %v467_v41 = vxor.u32 2147483648, %v874_v33 }
 0x11a   : > { %v464_v34 = vxor.u32 2147483648, %v876_v47  ;;  %v545_v40 = vshrl.u32 %v527_v19, %v543_v22  ;;  %v548_v42 = vadd.s32 127, %v547_v35 }
 0x11b   : > { %v468_v37 = vsel %vm466_vm10, %v467_v41, %v876_v47 }
 0x11c   : > { %v465_v50 = vsel %vm463_vm12, %v874_v33, %v464_v34  ;;  %v546_v54 = vor.u32 %v545_v40, %v544_v26  ;;  %v549_v59 = vshll.u32 %v548_v42, 23 }
 0x11d   : > { %v469_v44 = vsel %vm462_vm11, %v465_v50, %v468_v37 }
 0x11e   : > { %v470_v48 = vsel %vm460_vm13, nan, %v469_v44  ;;  %v550_v49 = vor.u32 4788187, %v549_v59  ;;  %v553_v61 = vcvt.s32.f32 %v546_v54 }
 0x11f   : > { %678 = vst [vmem:[%s1286_s8 + $0x8] sm:$0xff] %v470_v48 }
 0x120   : > { %v551_v58 = vand.u32 2147483647, %v550_v49 }
 0x122   : > { %v554_v39 = vmul.f32 %v553_v61, %v551_v58 }
 0x124   : > { %v555_v0 = vxor.u32 2147483648, %v554_v39 }
 0x126   : > { %v556_v43 = vsel %vm473_vm14, %v555_v0, %v554_v39 }
 0x127   : > { %v559_v60 = vsel %vm472_vm15, %v1127_v51, %v556_v43 }
 0x128   : > { %877 = vcosq.f32 %v559_v60 }
 0x129   : > { %879 = vsinq.f32 %v559_v60 }
 0x135   : > { %v878_v4 = vpop.eup %877 }
 0x136   : > { %v880_v57 = vpop.eup %879  ;;  %v570_v27 = vxor.u32 2147483648, %v878_v4 }
 0x137   : > { %v567_v2 = vxor.u32 2147483648, %v880_v57 }
 0x138   : > { %v571_v55 = vsel %vm569_vm0, %v570_v27, %v880_v57 }
 0x139   : > { %v568_v10 = vsel %vm566_vm1, %v878_v4, %v567_v2 }
 0x13a   : > { %v572_v62 = vsel %vm565_vm2, %v568_v10, %v571_v55 }
 0x13b   : > { %v573_v5 = vsel %vm563_vm3, nan, %v572_v62 }
 0x13c   : > { %679 = vst [vmem:[%s1286_s8 + $0x10] sm:$0xff] %v573_v5 }
 0x13d   : > { %894 = shalt.err (!%p891_p3)
}
 0x13e   : > { %s895_s27 = scalar_lea.hbm %s1333_s22, 512  ;;  %s899_s30 = scalar_lea.hbm %s1383_s2, 1024 }
 0x13f   : > { %p896_p4 = scmp.ne.s32.totalorder %s1333_s22, %s895_s27  ;;  %p900_p9 = scmp.lt.s32.totalorder %s1333_s22, %s1383_s2 }
 0x140   : > { %p901_p10 = scmp.lt.s32.totalorder %s899_s30, %s895_s27 }
 0x141   : > { %p897_p7 = pnand %p896_p4, %p1009_p5 }
 0x142   : > { %p902_p11 = por %p901_p10, %p900_p9 }
 0x143   : > { %p898_p8 = pneg %p897_p7 }
 0x145   : > { %p903_p12 = pnand %p902_p11, %p898_p8 }
 0x147   : > { %906 = shalt.err (!%p903_p12)
}
 0x148   : > { %s954_s5 = smov 128   ;;  %s955_s6 = smov 8  }
 0x149   : > { %806 = dma.vmem_to_hbm [thread:$0]  (%p1009_p5), %s1335_s16, 512, %s1333_s22, %s1341_s13, %s954_s5, %s954_s5, %s955_s6  }
 0x14a PF: > { %p812_p13 = scmp.ge.s32.totalorder %s941_s12, 2  ;;  %s710_s7 = sand.u32 1, %s929_s9  }
 0x14b   : > { %s711_s8 = scalar_lea.sflag [#allocation3], %s710_s7 }
 0x14c   : > { %p809_p0 = pnand %p812_p13, %p1013_p6 }
 0x14e   : > { %p810_p1 = pneg %p809_p0 }
 0x150   : > { %924 = dma.done.wait (%p810_p1), %s711_s8, 512  }
 0x151   : > { %926 = vsyncadd (%p810_p1), %s711_s8, 4294966784  ;;  %p12_p2 = scmp.ge.s32.totalorder %s996_s15, 4   ;;  %s1390_s9 = smov %s933_s10 }
 0x152   : > { %s1391_s10 = smov %s937_s11  ;;  %s1392_s11 = smov %s1007_s18 }
 0x153   : > { %s1393_s12 = smov %s996_s15  ;;  %14 = sbr.rel (!%p12_p2) target bundleno = 3 (0x3), region = 63 }
 0x158   :  { %716 = vsyncpa [#allocation3], 1 }
 0x159   :  { %718 = vsyncpa [#allocation3 + $0x1], 1 }

</bundles_post_ra>
